<compile_context>
chip_gen: v7x
topology: tpu7x:2x2x1
jax: 0.10.0
libtpu: 0.0.40
codegen_flags: <defaults>
</compile_context>

<pallas_src>
import jax
import jax.numpy as jnp
from jax.experimental import pallas as pl
from jax.experimental.pallas import tpu as pltpu

_LANE = 128
_MAX_TILE_ROWS = 4096   # 4096x128 f32 = 2 MiB/buffer; in+out double-buffered = 8 MiB
_TARGET_STEPS = 8       # keep several grid steps so both v7x TCs get work


def _sublane_multiple(dtype) -> int:
    # Sub-32-bit dtypes pack 2/4 rows per sublane; keep tiles packing-aligned.
    itemsize = jnp.dtype(dtype).itemsize
    return {4: 8, 2: 16, 1: 32}.get(itemsize, 8)


def _cos_kernel(x_ref, o_ref):
    # Upcast to f32 inside the kernel: HBM traffic stays in the narrow dtype,
    # compute happens at full precision, then cast back on the store.
    o_ref[...] = jnp.cos(x_ref[...].astype(jnp.float32)).astype(o_ref.dtype)


def _cos_2d(x2d, out_dtype, tile_rows):
    rows, _ = x2d.shape
    grid = (pl.cdiv(rows, tile_rows),)
    nbytes = rows * _LANE * (
        jnp.dtype(x2d.dtype).itemsize + jnp.dtype(out_dtype).itemsize
    )
    return pl.pallas_call(
        _cos_kernel,
        out_shape=jax.ShapeDtypeStruct((rows, _LANE), out_dtype),
        grid=grid,
        in_specs=[pl.BlockSpec((tile_rows, _LANE), lambda i: (i, 0))],
        out_specs=pl.BlockSpec((tile_rows, _LANE), lambda i: (i, 0)),
        compiler_params=pltpu.CompilerParams(
            dimension_semantics=("parallel",),  # independent tiles -> both TCs on v7x
        ),
        cost_estimate=pl.CostEstimate(
            flops=0, transcendentals=rows * _LANE, bytes_accessed=nbytes
        ),
    )(x2d)


@jax.jit
def cos_op(x):
    """Pallas equivalent of torch.cos(input)."""
    orig_shape = x.shape
    total = x.size
    # torch.cos promotes integer inputs to floating point.
    out_dtype = x.dtype if jnp.issubdtype(x.dtype, jnp.floating) else jnp.float32

    if total == 0 or total % _LANE != 0:
        # Zero-size or lane-ragged: a wrapper pad+slice would add two full HBM
        # passes (~3x traffic); plain XLA cos is already at roofline here.
        return jnp.cos(x.astype(out_dtype))

    rows = total // _LANE
    sub = _sublane_multiple(x.dtype)
    if rows <= sub:
        tile_rows = rows  # single full-extent block (allowed: equals array dim)
    else:
        # Aim for ~_TARGET_STEPS grid steps, rounded to the packing sublane
        # multiple, capped so in+out double-buffering stays well inside the
        # scoped-VMEM default on every generation (incl. v5e's 16 MiB).
        tile_rows = ((pl.cdiv(rows, _TARGET_STEPS) + sub - 1) // sub) * sub
        tile_rows = min(tile_rows, _MAX_TILE_ROWS)

    out2d = _cos_2d(x.reshape(rows, _LANE), out_dtype, tile_rows)
    return out2d.reshape(orig_shape)


if __name__ == "__main__":
    key = jax.random.PRNGKey(0)
    # Small NCHW-style input, consistent with typical module test shapes.
    x = jax.random.normal(key, (2, 4, 16, 16), dtype=jnp.float32)
    out = jax.block_until_ready(cos_op(x))
    assert out.shape == x.shape and out.dtype == x.dtype
    assert bool(jnp.allclose(out, jnp.cos(x), atol=1e-5, rtol=1e-5))
    assert bool(jnp.isfinite(out).all())

    # Partial-last-block (masked) path: rows % tile_rows != 0, total % 128 == 0.
    y = jax.random.normal(jax.random.PRNGKey(1), (3, 224, 224), dtype=jnp.float32)
    out_y = jax.block_until_ready(cos_op(y))
    assert bool(jnp.allclose(out_y, jnp.cos(y), atol=1e-5, rtol=1e-5))

    # bf16: narrow HBM traffic, f32 compute inside the kernel.
    z = jax.random.normal(jax.random.PRNGKey(2), (2, 4, 16, 16), dtype=jnp.bfloat16)
    out_z = jax.block_until_ready(cos_op(z))
    ref_z = jnp.cos(z.astype(jnp.float32)).astype(jnp.bfloat16)
    assert out_z.dtype == jnp.bfloat16
    assert bool(
        jnp.allclose(out_z.astype(jnp.float32), ref_z.astype(jnp.float32), atol=2e-2)
    )

    # Lane-ragged fallback (pure XLA path, no pad/slice).
    w = jax.random.normal(jax.random.PRNGKey(3), (3, 5, 7), dtype=jnp.float32)
    out_w = jax.block_until_ready(cos_op(w))
    assert bool(jnp.allclose(out_w, jnp.cos(w), atol=1e-5, rtol=1e-5))

    print("KERNEL_OK")
</pallas_src>

<mosaic_0001>
module attributes {stable_mosaic.version = 11 : i64} {
  func.func @_cos_kernel(%arg0: i32, %arg1: memref<8x128xf32, #tpu.memory_space<vmem>>, %arg2: memref<8x128xf32, #tpu.memory_space<vmem>>) attributes {dimension_semantics = [#tpu.dimension_semantics<parallel>], iteration_bounds = array<i64: 2>, scalar_prefetch = 0 : i64, scratch_operands = 0 : i64, tpu.core_type = #tpu.core_type<tc>, window_params = [{transform_indices = @transform_0, window_bounds = array<i64: 8, 128>}, {transform_indices = @transform_1, window_bounds = array<i64: 8, 128>}]} {
    %c0 = arith.constant 0 : index
    %c0_0 = arith.constant 0 : index
    %0 = vector.load %arg1[%c0, %c0_0] : memref<8x128xf32, #tpu.memory_space<vmem>>, vector<8x128xf32>
    %1 = math.cos %0 : vector<8x128xf32>
    %c0_1 = arith.constant 0 : index
    %c0_2 = arith.constant 0 : index
    %2 = vector.load %arg2[%c0_1, %c0_2] : memref<8x128xf32, #tpu.memory_space<vmem>>, vector<8x128xf32>
    tpu.vector_store %arg2[%c0_1, %c0_2], %1 {strides = array<i32>} : memref<8x128xf32, #tpu.memory_space<vmem>>, vector<8x128xf32>,
    return
  }
  func.func @transform_0(%arg0: i32) -> (i32, i32) {
    %c0_i32 = arith.constant 0 : i32
    %c0_i32_0 = arith.constant 0 : i32
    return %arg0, %c0_i32 : i32, i32
  }
  func.func @transform_1(%arg0: i32) -> (i32, i32) {
    %c0_i32 = arith.constant 0 : i32
    %c0_i32_0 = arith.constant 0 : i32
    return %arg0, %c0_i32 : i32, i32
  }
}

</mosaic_0001>

<bundles_post_ra>
// kernel: cos_op.1
= control target key start
LH: loop header
LB: loop body
LE: loop exit
PB: predicated region body
PF: predicated region fallthrough
CT: control target
= control target key end

     0   :  { %s329_s6 = smov 0   ;;  %s374_s0 = inlined_call_operand.vmem [shape: f32[16,128], index: 0, kind: input, shape index: {}]   ;;  %s375_s1 = inlined_call_operand.vmem [shape: f32[16,128], index: 1, kind: output, shape index: {}]  }
   0x1 LB: > { %s270_s7 = sadd.s32 4294967295, %s311_s6   ;;  %p274_p0 = scmp.ge.s32.totalorder %s311_s6, 1  ;;  %s311_s6 = sphi %s329_s6, %s11_s6  }
   0x2   : > { %p86_p1 = scmp.lt.s32.totalorder %s311_s6, 3 }
   0x4   : > { %p87_p2 = pnand %p274_p0, %p86_p1 }
   0x5   : > { %p104_p3 = scmp.lt.s32.totalorder (!%p87_p2), %s270_s7, 1  ;;  %v313_v12 = vmov (!%p87_p2), 683565275   ;;  %v314_v14 = vmov (!%p87_p2), 2475754826  }
   0x6   : > { %90 = sbr.rel (%p87_p2) target bundleno = 98 (0x62), region = 24  ;;  %v315_v16 = vmov (!%p87_p2), 2131351028   ;;  %v316_v18 = vmov (!%p87_p2), 2102212464  }
   0x7   : > { %v317_v20 = vmov (!%p87_p2), 920167782   ;;  %v318_v27 = vmov (!%p87_p2), 1326507024  }
   0xd   : > { %s377_s7 = smov (!%p104_p3, %s270_s7), 1 }
   0xe   : > { %s275_s8 = sshll.u32 %s377_s7, 3 }
   0xf   : > { %s107_s11 = scalar_lea.vmem %s374_s0, %s275_s8  ;;  %s111_s14 = scalar_lea.vmem %s375_s1, %s275_s8 }
  0x10   : > { %v345_v0 = vld [vmem:[%s107_s11] sm:$0xff] }
  0x11   : > { %v116_v1 = vand.u32 2139095040, %v345_v0  ;;  %v113_v3 = vand.u32 2147483647, %v345_v0  ;;  %vm115_vm7 = vcmp.lt.s32.totalorder %v345_v0, 0  ;;  %vm205_vm12 = vweird.f32 %v345_v0 }
  0x13   : > { %v117_v2 = vshrl.u32 %v116_v1, 23  ;;  %v120_v6 = vand.u32 8388607, %v113_v3  ;;  %vm114_vm8 = vcmp.le.f32.partialorder %v113_v3, 0.7853982 }
  0x15   : > { %v277_v4 = vadd.s32 4294967169, %v117_v2  ;;  %v121_v9 = vor.u32 8388608, %v120_v6 }
  0x17   : > { %v123_v5 = vadd.s32 1, %v277_v4  ;;  %v161_v29 = vshll.u32 %v121_v9, 8 }
  0x19   : > { %vm124_vm0 = vcmp.gt.s32.totalorder %v123_v5, 0 }
  0x1a   : > { %v125_v7 = vsel %vm124_vm0, %v123_v5, 0 }
  0x1b   : > { %v127_v8 = vand.u32 31, %v125_v7  ;;  %v126_v10 = vshrl.u32 %v125_v7, 5 }
  0x1d   : > { %v128_v11 = vsub.s32 32, %v127_v8  ;;  %v130_v13 = vshll.u32 %v313_v12, %v127_v8  ;;  %v133_v15 = vshll.u32 %v314_v14, %v127_v8  ;;  %v136_v17 = vshll.u32 %v315_v16, %v127_v8 }
  0x1e   : > { %v139_v19 = vshll.u32 %v316_v18, %v127_v8  ;;  %v142_v21 = vshll.u32 %v317_v20, %v127_v8  ;;  %vm145_vm1 = vcmp.lt.s32.totalorder %v126_v10, 1  ;;  %vm148_vm2 = vcmp.lt.s32.totalorder %v126_v10, 4 }
  0x1f   : > { %v129_v22 = vshrl.u32 %v313_v12, %v128_v11  ;;  %v131_v23 = vshrl.u32 %v314_v14, %v128_v11  ;;  %v134_v24 = vshrl.u32 %v315_v16, %v128_v11  ;;  %v137_v25 = vshrl.u32 %v316_v18, %v128_v11 }
  0x20   : > { %v140_v26 = vshrl.u32 %v317_v20, %v128_v11  ;;  %v143_v28 = vshrl.u32 %v318_v27, %v128_v11  ;;  %vm146_vm3 = vcmp.lt.s32.totalorder %v126_v10, 2  ;;  %vm147_vm4 = vcmp.lt.s32.totalorder %v126_v10, 3 }
  0x21   : > { %v132_v30 = vor.u32 %v131_v23, %v130_v13  ;;  %v135_v31 = vor.u32 %v134_v24, %v133_v15  ;;  %v138_v32 = vor.u32 %v137_v25, %v136_v17 }
  0x22   : > { %v141_v33 = vor.u32 %v140_v26, %v139_v19  ;;  %v144_v34 = vor.u32 %v143_v28, %v142_v21 }
  0x23   : > { %v149_v35 = vsel %vm145_vm1, %v129_v22, %v132_v30  ;;  %v150_v36 = vsel %vm148_vm2, %v138_v32, 2102212464  ;;  %v153_v37 = vsel %vm145_vm1, %v132_v30, %v135_v31  ;;  %v157_v38 = vsel %vm145_vm1, %v135_v31, %v138_v32 }
  0x24   : > { %v151_v39 = vsel %vm147_vm4, %v135_v31, %v150_v36  ;;  %v154_v40 = vsel %vm148_vm2, %v141_v33, 920167782  ;;  %v158_v41 = vsel %vm148_vm2, %v144_v34, 1326507024 }
  0x25   : > { %v155_v42 = vsel %vm147_vm4, %v138_v32, %v154_v40  ;;  %v159_v43 = vsel %vm147_vm4, %v141_v33, %v158_v41  ;;  %v152_v44 = vsel %vm146_vm3, %v149_v35, %v151_v39 }
  0x26   : > { %v156_v45 = vsel %vm146_vm3, %v153_v37, %v155_v42  ;;  %v160_v46 = vsel %vm146_vm3, %v157_v38, %v159_v43  ;;  %v168_v51 = vmul.u32 %v161_v29, %v152_v44 }
  0x27   : > { %v351_v47 = vmul.u32.u64.low %v161_v29, %v160_v46  ;;  %v352_v48 = vmul.u32.u64.high %v161_v29, %v160_v46, %v351_v47  ;;  %v354_v49 = vmul.u32.u64.low %v161_v29, %v156_v45  ;;  %v355_v50 = vmul.u32.u64.high %v161_v29, %v156_v45, %v354_v49 }
  0x29   : > { %vm170_vm5 = vc.u32 %v352_v48, %v354_v49  ;;  %v171_v52 = vadd.s32 1, %v355_v50  ;;  %v169_v63 = vadd.s32 %v354_v49, %v352_v48 }
  0x2b   : > { %v172_v53 = vsel %vm170_vm5, %v171_v52, %v355_v50 }
  0x2c   : > { %v173_v54 = vadd.s32 %v172_v53, %v168_v51 }
  0x2e   : > { %v174_v55 = vadd.s32 536870912, %v173_v54 }
  0x30   : > { %v175_v56 = vshrl.u32 %v174_v55, 30 }
  0x32   : > { %v176_v57 = vshll.u32 %v175_v56, 30  ;;  %v199_v15 = vsub.s32 4, %v175_v56 }
  0x34   : > { %v177_v58 = vsub.s32 %v173_v54, %v176_v57  ;;  %v200_v18 = vsel %vm115_vm7, %v199_v15, %v175_v56 }
  0x35   : > { %v202_v19 = vsel %vm114_vm8, 0, %v200_v18 }
  0x36   : > { %v179_v59 = vsub.s32 0, %v177_v58  ;;  %v206_v20 = vand.u32 3, %v202_v19 }
  0x38   : > { %v278_v60 = vmin.u32 %v179_v59, %v177_v58  ;;  %vm211_vm9 = vcmp.eq.s32.totalorder %v206_v20, 2  ;;  %vm208_vm10 = vcmp.eq.s32.totalorder %v206_v20, 0  ;;  %vm207_vm11 = vcmp.lt.s32.totalorder %v206_v20, 2 }
  0x3a   : > { %v181_v61 = vclz %v278_v60 }
  0x3c   : > { %v279_v62 = vadd.s32 4294967294, %v181_v61 }
  0x3e   : > { %vm280_vm6 = vcmp.lt.s32.totalorder %v279_v62, 0 }
  0x3f   : > { %v184_v1 = vsel %vm280_vm6, 0, %v279_v62 }
  0x40   : > { %v185_v2 = vsub.s32 32, %v184_v1  ;;  %v186_v4 = vshll.u32 %v177_v58, %v184_v1  ;;  %v189_v5 = vsub.s32 4294967266, %v184_v1 }
  0x42   : > { %v187_v6 = vshrl.u32 %v169_v63, %v185_v2  ;;  %v190_v7 = vadd.s32 127, %v189_v5 }
  0x44   : > { %v188_v8 = vor.u32 %v187_v6, %v186_v4  ;;  %v191_v9 = vshll.u32 %v190_v7, 23 }
  0x46   : > { %v192_v10 = vor.u32 4788187, %v191_v9  ;;  %v195_v11 = vcvt.s32.f32 %v188_v8 }
  0x48   : > { %v193_v12 = vand.u32 2147483647, %v192_v10 }
  0x4a   : > { %v196_v13 = vmul.f32 %v195_v11, %v193_v12 }
  0x4c   : > { %v197_v14 = vxor.u32 2147483648, %v196_v13 }
  0x4e   : > { %v198_v16 = vsel %vm115_vm7, %v197_v14, %v196_v13 }
  0x4f   : > { %v201_v17 = vsel %vm114_vm8, %v345_v0, %v198_v16 }
  0x50   : > { %301 = vcosq.f32 %v201_v17 }
  0x51   : > { %303 = vsinq.f32 %v201_v17 }
  0x5a   : > { %v302_v21 = vpop.eup %301 }
  0x5b   : > { %v304_v22 = vpop.eup %303  ;;  %v212_v23 = vxor.u32 2147483648, %v302_v21 }
  0x5c   : > { %v209_v24 = vxor.u32 2147483648, %v304_v22 }
  0x5d   : > { %v213_v3 = vsel %vm211_vm9, %v212_v23, %v304_v22 }
  0x5e   : > { %v210_v25 = vsel %vm208_vm10, %v302_v21, %v209_v24 }
  0x5f   : > { %v214_v26 = vsel %vm207_vm11, %v210_v25, %v213_v3 }
  0x60   : > { %v215_v27 = vsel %vm205_vm12, nan, %v214_v26 }
  0x61   : > { %216 = vst [vmem:[%s111_s14] sm:$0xff] %v215_v27 }
  0x62 PF: > { %s11_s6 = sadd.s32 1, %s311_s6  }
  0x63   : > { %p8_p4 = scmp.ge.s32.totalorder %s11_s6, 4  }
  0x65   :  { %10 = sbr.rel (!%p8_p4) target bundleno = 1 (0x1), region = 54 }

</bundles_post_ra>
